<compile_context>
chip_gen: v5e
topology: v5e:2x2
jax: 0.10.0
libtpu: 0.0.40
codegen_flags: <defaults>
</compile_context>

<pallas_src>
import jax
import jax.numpy as jnp
from jax import lax
from jax.experimental import pallas as pl
from jax.experimental.pallas import tpu as pltpu


def _fc_kernel(x_ref, w_ref, o_ref):
    # x_ref: (tm, K), w_ref: (C_pad, K) -- PyTorch weight layout, contracted over K (NT matmul).
    o_ref[...] = lax.dot_general(
        x_ref[...], w_ref[...],
        dimension_numbers=(((1,), (1,)), ((), ())),
        preferred_element_type=jnp.float32,
    ).astype(o_ref.dtype)


def _round_up(n, m):
    return -(-n // m) * m


def feat_classifier_forward(x, weight, *, tm=256):
    """x: (B, bottleneck_dim) f32, weight: (class_num, bottleneck_dim) f32 (PyTorch layout).
    Returns (B, class_num) = x @ weight.T  (nn.Linear, bias=False)."""
    B, K = x.shape
    C, Kw = weight.shape
    assert K == Kw, "bottleneck_dim mismatch between x and weight"

    # Lane-dense output: pad the class dim up to a multiple of 128 (unmasked vector stores).
    C_pad = _round_up(C, 128)
    # Sublane alignment for the batch dim.
    B8 = _round_up(B, 8)

    w_pad = weight if C_pad == C else jnp.pad(weight, ((0, C_pad - C), (0, 0)))

    # Batch tiling: single block when the batch is small, otherwise tile M only.
    if B8 <= tm:
        tm = B8
    B_pad = _round_up(B8, tm)
    x_pad = x if B_pad == B else jnp.pad(x, ((0, B_pad - B), (0, 0)))
    m_tiles = B_pad // tm

    if m_tiles == 1:
        # Whole problem in one VMEM block: no grid, no scratch, one dot, direct write.
        out = pl.pallas_call(
            _fc_kernel,
            out_shape=jax.ShapeDtypeStruct((B_pad, C_pad), x.dtype),
        )(x_pad, w_pad)
    else:
        # Larger batches: tile only M; weight (C_pad, K) stays resident across the grid.
        out = pl.pallas_call(
            _fc_kernel,
            out_shape=jax.ShapeDtypeStruct((B_pad, C_pad), x.dtype),
            grid_spec=pltpu.PrefetchScalarGridSpec(
                num_scalar_prefetch=0,
                grid=(m_tiles,),
                in_specs=[
                    pl.BlockSpec((tm, K), lambda i: (i, 0)),
                    pl.BlockSpec((C_pad, K), lambda i: (0, 0)),
                ],
                out_specs=pl.BlockSpec((tm, C_pad), lambda i: (i, 0)),
            ),
            compiler_params=pltpu.CompilerParams(
                dimension_semantics=("parallel",)),
        )(x_pad, w_pad)

    return out[:B, :C]


if __name__ == "__main__":
    # feat_classifier(class_num=16, bottleneck_dim=256, type='linear')
    class_num = 16
    bottleneck_dim = 256
    batch = 8

    key = jax.random.PRNGKey(0)
    kx, kw = jax.random.split(key)
    x = jax.random.normal(kx, (batch, bottleneck_dim), dtype=jnp.float32)
    # Deterministic synthetic weight init (stands in for init_weights / xavier).
    weight = jax.random.normal(kw, (class_num, bottleneck_dim), dtype=jnp.float32) * 0.02

    out = feat_classifier_forward(x, weight)
    out = jax.block_until_ready(out)

    ref = x @ weight.T
    assert out.shape == (batch, class_num)
    assert jnp.allclose(out, ref, atol=1e-5, rtol=1e-5)

    # Also exercise the tiled (multi-block) path to make sure it stays correct.
    xb = jax.random.normal(kx, (600, bottleneck_dim), dtype=jnp.float32)
    outb = jax.block_until_ready(feat_classifier_forward(xb, weight))
    assert outb.shape == (600, class_num)
    assert jnp.allclose(outb, xb @ weight.T, atol=1e-4, rtol=1e-4)

    print("KERNEL_OK")
</pallas_src>

<mosaic_0001>
module attributes {stable_mosaic.version = 11 : i64} {
  func.func @_fc_kernel(%arg0: memref<8x256xf32, #tpu.memory_space<vmem>>, %arg1: memref<128x256xf32, #tpu.memory_space<vmem>>, %arg2: memref<8x128xf32, #tpu.memory_space<vmem>>) attributes {dimension_semantics = [], scalar_prefetch = 0 : i64, scratch_operands = 0 : i64, tpu.core_type = #tpu.core_type<tc>} {
    %c0 = arith.constant 0 : index
    %c0_0 = arith.constant 0 : index
    %0 = vector.load %arg0[%c0, %c0_0] : memref<8x256xf32, #tpu.memory_space<vmem>>, vector<8x256xf32>
    %c0_1 = arith.constant 0 : index
    %c0_2 = arith.constant 0 : index
    %1 = vector.load %arg1[%c0_1, %c0_2] : memref<128x256xf32, #tpu.memory_space<vmem>>, vector<128x256xf32>
    %cst = arith.constant dense<0.000000e+00> : vector<8x128xf32>
    %2 = tpu.matmul %0, %1, %cst {dimension_numbers = #tpu.dot_dimension_numbers<[1], [1], [0], [0], [0, 0, 1, 0], [], []>} : vector<8x256xf32>, vector<128x256xf32>, vector<8x128xf32> -> vector<8x128xf32>
    %c0_3 = arith.constant 0 : index
    %c0_4 = arith.constant 0 : index
    %3 = vector.load %arg2[%c0_3, %c0_4] : memref<8x128xf32, #tpu.memory_space<vmem>>, vector<8x128xf32>
    tpu.vector_store %arg2[%c0_3, %c0_4], %2 {strides = array<i32>} : memref<8x128xf32, #tpu.memory_space<vmem>>, vector<8x128xf32>,
    return
  }
}

</mosaic_0001>

<bundles_post_ra>
// kernel: tpu_custom_call.1
= control target key start
LH: loop header
LB: loop body
LE: loop exit
PB: predicated region body
PF: predicated region fallthrough
CT: control target
= control target key end

     0   :  { %7 = vsyncpa [#allocation3], 0  ;;  %s247_s0 = inlined_call_operand.hbm [shape: f32[8,256], index: 0, kind: input, shape index: {}]   ;;  %s248_s1 = inlined_call_operand.hbm [shape: f32[128,256], index: 1, kind: input, shape index: {}]   ;;  %s249_s2 = inlined_call_operand.hbm [shape: f32[8,128], index: 2, kind: output, shape index: {}]  }
   0x1   :  { %8 = vsyncpa [#allocation6], 0 }
   0x2   :  { %9 = vsyncpa [#allocation4], 0  ;;  %s15_s11 = sshll.u32 %s247_s0, 4  ;;  %s218_s12 = smov [#allocation2]   ;;  %s16_s11 = int_to_ptr.hbm [resolvable:$true] %s15_s11 }
   0x3   :  { %s17_s13 = sshll.u32 %s218_s12, 4  ;;  %s25_s16 = sshll.u32 %s248_s1, 4  ;;  %s18_s13 = int_to_ptr.vmem [resolvable:$true] %s17_s13  ;;  %s26_s16 = int_to_ptr.hbm [resolvable:$true] %s25_s16 }
   0x4   :  { %20 = dma.hbm_to_vmem [thread:$0]  %s16_s11, 256, %s18_s13, [#allocation3]  }
   0x5   :  { %s219_s17 = smov [#allocation5]   ;;  %s220_s19 = smov 256  }
   0x6   :  { %s27_s18 = sshll.u32 %s219_s17, 4  ;;  %s221_s20 = smov 16   ;;  %s28_s18 = int_to_ptr.vmem [resolvable:$true] %s27_s18 }
   0x7   :  { %33 = dma.hbm_to_vmem [thread:$0]  %s26_s16, 4096, %s28_s18, [#allocation6], %s220_s19, %s220_s19, %s221_s20  }
   0x8   :  { %212 = dma.done.wait [#allocation3], 256  }
   0x9   :  { %213 = vsyncadd [#allocation3], 4294967040 }
   0xa   :  { %214 = dma.done.wait [#allocation6], 4096  }
   0xb   :  { %215 = vsyncadd [#allocation6], 4294963200  ;;  %v74_v0 = vld [vmem:[#allocation5 + $0xf0] sm:$0xff]  ;;  %v75_v1 = vld [vmem:[#allocation5 + $0xf8] sm:$0xff]  ;;  %s222_s0 = smov [#allocation7]   ;;  %s124_s23 = sshll.u32 %s249_s2, 4  ;;  %s125_s23 = int_to_ptr.hbm [resolvable:$true] %s124_s23 }
   0xc   :  { %76 = vmatpush.xpose.msra.mxu0 %v74_v0  ;;  %96 = vmatpush.xpose.msra.mxu1 %v75_v1  ;;  %v72_v2 = vld [vmem:[#allocation5 + $0xe0] sm:$0xff]  ;;  %v73_v3 = vld [vmem:[#allocation5 + $0xe8] sm:$0xff]  ;;  %v70_v4 = vld [vmem:[#allocation5 + $0xd0] sm:$0xff]  ;;  %s122_s1 = sshll.u32 %s222_s0, 4  ;;  %s123_s1 = int_to_ptr.vmem [resolvable:$true] %s122_s1 }
   0xd   :  { %v71_v5 = vld [vmem:[#allocation5 + $0xd8] sm:$0xff]  ;;  %v68_v6 = vld [vmem:[#allocation5 + $0xc0] sm:$0xff]  ;;  %v69_v7 = vld [vmem:[#allocation5 + $0xc8] sm:$0xff] }
   0xe   :  { %v66_v8 = vld [vmem:[#allocation5 + $0xb0] sm:$0xff]  ;;  %v67_v9 = vld [vmem:[#allocation5 + $0xb8] sm:$0xff]  ;;  %v64_v10 = vld [vmem:[#allocation5 + $0xa0] sm:$0xff] }
   0xf   :  { %v65_v11 = vld [vmem:[#allocation5 + $0xa8] sm:$0xff]  ;;  %v62_v12 = vld [vmem:[#allocation5 + $0x90] sm:$0xff]  ;;  %v63_v13 = vld [vmem:[#allocation5 + $0x98] sm:$0xff] }
  0x10   :  { %77 = vmatpush.xpose.msra.mxu0 %v72_v2  ;;  %97 = vmatpush.xpose.msra.mxu1 %v73_v3  ;;  %v60_v14 = vld [vmem:[#allocation5 + $0x80] sm:$0xff]  ;;  %v61_v15 = vld [vmem:[#allocation5 + $0x88] sm:$0xff]  ;;  %v58_v16 = vld [vmem:[#allocation5 + $0x70] sm:$0xff] }
  0x11   :  { %v59_v17 = vld [vmem:[#allocation5 + $0x78] sm:$0xff]  ;;  %v56_v18 = vld [vmem:[#allocation5 + $0x60] sm:$0xff]  ;;  %v57_v19 = vld [vmem:[#allocation5 + $0x68] sm:$0xff] }
  0x12   :  { %v54_v20 = vld [vmem:[#allocation5 + $0x50] sm:$0xff]  ;;  %v55_v21 = vld [vmem:[#allocation5 + $0x58] sm:$0xff]  ;;  %v52_v22 = vld [vmem:[#allocation5 + $0x40] sm:$0xff] }
  0x13   :  { %v53_v23 = vld [vmem:[#allocation5 + $0x48] sm:$0xff]  ;;  %v50_v24 = vld [vmem:[#allocation5 + $0x30] sm:$0xff]  ;;  %v51_v25 = vld [vmem:[#allocation5 + $0x38] sm:$0xff] }
  0x14   :  { %78 = vmatpush.xpose.msra.mxu0 %v70_v4  ;;  %98 = vmatpush.xpose.msra.mxu1 %v71_v5  ;;  %v48_v26 = vld [vmem:[#allocation5 + $0x20] sm:$0xff]  ;;  %v49_v27 = vld [vmem:[#allocation5 + $0x28] sm:$0xff]  ;;  %v46_v28 = vld [vmem:[#allocation5 + $0x10] sm:$0xff] }
  0x15   :  { %v47_v29 = vld [vmem:[#allocation5 + $0x18] sm:$0xff]  ;;  %v44_v30 = vld [vmem:[#allocation5] sm:$0xff]  ;;  %v45_v31 = vld [vmem:[#allocation5 + $0x8] sm:$0xff] }
  0x16   :  { %v42_v32 = vld [vmem:[#allocation2] sm:$0xff]  ;;  %v43_v33 = vld [vmem:[#allocation2 + $0x8] sm:$0xff] }
  0x18   :  { %79 = vmatpush.xpose.msra.mxu0 %v68_v6  ;;  %99 = vmatpush.xpose.msra.mxu1 %v69_v7 }
  0x1c   :  { %80 = vmatpush.xpose.msra.mxu0 %v66_v8  ;;  %100 = vmatpush.xpose.msra.mxu1 %v67_v9 }
  0x20   :  { %81 = vmatpush.xpose.msra.mxu0 %v64_v10  ;;  %101 = vmatpush.xpose.msra.mxu1 %v65_v11 }
  0x24   :  { %82 = vmatpush.xpose.msra.mxu0 %v62_v12  ;;  %102 = vmatpush.xpose.msra.mxu1 %v63_v13 }
  0x28   :  { %83 = vmatpush.xpose.msra.mxu0 %v60_v14  ;;  %103 = vmatpush.xpose.msra.mxu1 %v61_v15 }
  0x2c   :  { %84 = vmatpush.xpose.msra.mxu0 %v58_v16  ;;  %104 = vmatpush.xpose.msra.mxu1 %v59_v17 }
  0x30   :  { %85 = vmatpush.xpose.msra.mxu0 %v56_v18  ;;  %105 = vmatpush.xpose.msra.mxu1 %v57_v19 }
  0x34   :  { %86 = vmatpush.xpose.msra.mxu0 %v54_v20  ;;  %106 = vmatpush.xpose.msra.mxu1 %v55_v21 }
  0x38   :  { %87 = vmatpush.xpose.msra.mxu0 %v52_v22  ;;  %107 = vmatpush.xpose.msra.mxu1 %v53_v23 }
  0x3c   :  { %88 = vmatpush.xpose.msra.mxu0 %v50_v24  ;;  %108 = vmatpush.xpose.msra.mxu1 %v51_v25 }
  0x40   :  { %89 = vmatpush.xpose.msra.mxu0 %v48_v26  ;;  %109 = vmatpush.xpose.msra.mxu1 %v49_v27 }
  0x44   :  { %90 = vmatpush.xpose.msra.mxu0 %v46_v28  ;;  %110 = vmatpush.xpose.msra.mxu1 %v47_v29 }
  0x48   :  { %91 = vmatpush.xpose.msra.mxu0 %v44_v30  ;;  %111 = vmatpush.xpose.msra.mxu1 %v45_v31 }
  0x4b   :  { %92 = vmatmul.f32.vlgmr.msra.gmra.mxu0 %v42_v32  ;;  %112 = vmatmul.f32.vlgmr.msra.gmra.mxu1 %v43_v33 }
  0xc8   :  { %v93_v34 = vpop.f32.mrf.mxu0  ;;  %v113_v35 = vpop.f32.mrf.mxu1 }
  0xc9   :  { %v114_v36 = vadd.f32 %v113_v35, %v93_v34 }
  0xcb   :  { %116 = vst [vmem:[#allocation7] sm:$0xff] %v114_v36 }
  0xcc   :  { %127 = dma.vmem_to_hbm [thread:$0]  %s123_s1, 128, %s125_s23, [#allocation4]  }
  0xcd   :  { %216 = dma.done.wait [#allocation4], 128  }
  0xce   :  { %217 = vsyncadd [#allocation4], 4294967168 }
  0xcf   :  { %132 = vsyncpa [#allocation3], 1 }
  0xd0   :  { %133 = vsyncpa [#allocation6], 1 }
  0xd1   :  { %134 = vsyncpa [#allocation4], 1 }

</bundles_post_ra>
